<compile_context>
chip_gen: v6e
topology: v6e:2x2x1
jax: 0.10.0
libtpu: 0.0.40
codegen_flags: <defaults>
</compile_context>

<pallas_src>
import functools

import numpy as np
import jax
import jax.numpy as jnp
from jax.experimental import pallas as pl
from jax.experimental.pallas import tpu as pltpu

# Stand-ins for the external CLASSIFIER_CONFIG / CAM_CONFIG dicts.
FOREGROUND_BIAS = 1.5     # CAM_CONFIG['foreground_bias']
EDGE_ENHANCEMENT = 1.5    # CAM_CONFIG['edge_enhancement']
FEATURE_DIM = 512         # resnet18 backbone
NUM_CLASSES = 2
_LANE = 128
_TAPS = tuple((dy, dx) for dy in (-1, 0, 1) for dx in (-1, 0, 1))


# --------------------------------------------------------------------------
# ResNet18 backbone (plain-JAX glue).
# TODO(synk): torchvision ResNet18 (layer1..layer4, pretrained IMAGENET1K_V1)
# is reproduced structurally in plain JAX with deterministic synthetic weights
# and eval-mode BatchNorm (identity stats); it is not ported to Pallas — the
# custom CAM head below is the Pallas kernel.
# --------------------------------------------------------------------------
_BN_SCALE = float(1.0 / np.sqrt(1.0 + 1e-5))


def _bn(x):
    return x * _BN_SCALE


def _conv(x, w, stride, pad):
    return jax.lax.conv_general_dilated(
        x, w, (stride, stride), [(pad, pad), (pad, pad)],
        dimension_numbers=("NHWC", "HWIO", "NHWC"))


def _he_conv(key, kh, kw, cin, cout):
    std = float(np.sqrt(2.0 / (kh * kw * cin)))
    return jax.random.normal(key, (kh, kw, cin, cout), jnp.float32) * std


def init_backbone(key):
    keys = iter(jax.random.split(key, 64))

    def block(cin, cout, stride):
        d = {"conv1": _he_conv(next(keys), 3, 3, cin, cout),
             "conv2": _he_conv(next(keys), 3, 3, cout, cout)}
        if stride != 1 or cin != cout:
            d["down"] = _he_conv(next(keys), 1, 1, cin, cout)
        return d

    p = {"stem": _he_conv(next(keys), 7, 7, 3, 64)}
    p["layer1"] = [block(64, 64, 1), block(64, 64, 1)]
    p["layer2"] = [block(64, 128, 2), block(128, 128, 1)]
    p["layer3"] = [block(128, 256, 2), block(256, 256, 1)]
    p["layer4"] = [block(256, 512, 2), block(512, 512, 1)]
    return p


def _basic_block(x, bp, stride):
    out = jax.nn.relu(_bn(_conv(x, bp["conv1"], stride, 1)))
    out = _bn(_conv(out, bp["conv2"], 1, 1))
    sc = _bn(_conv(x, bp["down"], stride, 0)) if "down" in bp else x
    return jax.nn.relu(out + sc)


def backbone(x_nchw, p):
    x = jnp.transpose(x_nchw, (0, 2, 3, 1))             # NCHW -> NHWC
    x = jax.nn.relu(_bn(_conv(x, p["stem"], 2, 3)))      # 7x7 s2 p3
    x = jax.lax.reduce_window(x, -jnp.inf, jax.lax.max,  # maxpool 3x3 s2 p1
                              (1, 3, 3, 1), (1, 2, 2, 1),
                              ((0, 0), (1, 1), (1, 1), (0, 0)))
    for name, stride in (("layer1", 1), ("layer2", 2), ("layer3", 2), ("layer4", 2)):
        for bi, bp in enumerate(p[name]):
            x = _basic_block(x, bp, stride if bi == 0 else 1)
    return x                                             # [B, H/32, W/32, 512]


# --------------------------------------------------------------------------
# Head parameters (deterministic synthetic init, PyTorch-shaped).
# --------------------------------------------------------------------------
def init_head(key, C, n_classes):
    keys = iter(jax.random.split(key, 16))
    c16 = C // 16
    return {
        "ca_w1": jax.random.normal(next(keys), (c16, C), jnp.float32) / np.sqrt(C),
        "ca_b1": jax.random.normal(next(keys), (c16,), jnp.float32) * 0.01,
        "ca_w2": jax.random.normal(next(keys), (C, c16), jnp.float32) / np.sqrt(c16),
        "ca_b2": jax.random.normal(next(keys), (C,), jnp.float32) * 0.01,
        "sa_w": jax.random.normal(next(keys), (1, 2, 7, 7), jnp.float32) / np.sqrt(2 * 49),
        "edge_w": jax.random.normal(next(keys), (C, 4, 3, 3), jnp.float32) / np.sqrt(4 * 9),
        "fuse_w": jax.random.normal(next(keys), (C, C), jnp.float32) / np.sqrt(C),
        "fc_w": jax.random.normal(next(keys), (n_classes, C), jnp.float32) / np.sqrt(C),
        "fc_b": jax.random.normal(next(keys), (n_classes,), jnp.float32) * 0.01,
    }


# --------------------------------------------------------------------------
# pltpu.roll direction probe — makes the kernel's shift amounts independent of
# the hardware rotate convention (probed once, eagerly, then cached).
# --------------------------------------------------------------------------
_ROLL_SIGNS = None


def _get_roll_signs():
    global _ROLL_SIGNS
    if _ROLL_SIGNS is None:
        def probe(x_ref, a_ref, b_ref):
            a_ref[...] = pltpu.roll(x_ref[...], shift=1, axis=0)
            b_ref[...] = pltpu.roll(x_ref[...], shift=1, axis=1)

        x = jnp.arange(8 * 128, dtype=jnp.float32).reshape(8, 128)
        a, b = pl.pallas_call(
            probe,
            out_shape=(jax.ShapeDtypeStruct((8, 128), jnp.float32),
                       jax.ShapeDtypeStruct((8, 128), jnp.float32)))(x)
        sub = 1 if bool(jnp.all(a == jnp.roll(x, 1, axis=0))) else -1
        lane = 1 if bool(jnp.all(b == jnp.roll(x, 1, axis=1))) else -1
        _ROLL_SIGNS = (sub, lane)
    return _ROLL_SIGNS


# --------------------------------------------------------------------------
# One-time host-side operator preparation (hoisted out of the forward path).
# --------------------------------------------------------------------------
def prepare_head(hp, Hf, Wf, n_classes=NUM_CLASSES):
    """Builds the compact, kernel-ready operators from the PyTorch-shaped head
    parameters.  Pure numpy on concrete weights; call once per (H, W, params)."""
    _get_roll_signs()                         # probe outside any jit trace
    C = int(np.asarray(hp["fc_w"]).shape[1])
    c16 = int(np.asarray(hp["ca_w1"]).shape[0])
    HW = Hf * Wf
    n_pad = ((max(n_classes, 1) + _LANE - 1) // _LANE) * _LANE
    h_pad = ((c16 + _LANE - 1) // _LANE) * _LANE

    # SE (channel attention) weights with the hidden dim padded to 128 lanes.
    # Padded lanes have zero in-weights/bias and zero out-weights, so they
    # contribute exactly nothing (relu(0) * 0) — lane-dense, still exact.
    w1t = np.zeros((C, h_pad), np.float32)
    w1t[:, :c16] = np.asarray(hp["ca_w1"], np.float32).T
    b1 = np.zeros((1, h_pad), np.float32)
    b1[0, :c16] = np.asarray(hp["ca_b1"], np.float32)
    w2t = np.zeros((h_pad, C), np.float32)
    w2t[:c16, :] = np.asarray(hp["ca_w2"], np.float32).T
    b2 = np.asarray(hp["ca_b2"], np.float32).reshape(1, -1)

    # 7x7 'SAME' conv over the (max, avg) map -> one fused [2*HW, HW] operator.
    sa = np.asarray(hp["sa_w"], np.float32)               # [1, 2, 7, 7]
    M = np.zeros((2, HW, HW), np.float32)
    for ci in range(2):
        for y in range(Hf):
            for x in range(Wf):
                p = y * Wf + x
                for ky in range(7):
                    for kx in range(7):
                        yv, xv = y + ky - 3, x + kx - 3
                        if 0 <= yv < Hf and 0 <= xv < Wf:
                            M[ci, p, yv * Wf + xv] += sa[0, ci, ky, kx]
    w_sp = np.concatenate([M[0].T, M[1].T], axis=0)       # [2*HW, HW]

    # Compact block-diagonal grouped-conv weights (groups of 4 channels),
    # pre-rolled so the kernel only needs 7 lane rolls:
    #   edge = sum_s roll_lane(sum_t F_t * vp[s, t], s),  F_t = masked shift.
    ew = np.asarray(hp["edge_w"], np.float32)             # [C_out, 4, 3, 3]
    res = np.arange(C) % 4                                # position inside group
    vp = np.zeros((7, 9, C), np.float32)
    for si, s in enumerate(range(-3, 4)):
        j_in = res - s
        ok = (j_in >= 0) & (j_in <= 3)
        jc = np.clip(j_in, 0, 3)
        for t, (dy, dx) in enumerate(_TAPS):
            ky, kx = dy + 1, dx + 1
            v = np.where(ok, ew[np.arange(C), jc, ky, kx], 0.0).astype(np.float32)
            vp[si, t] = np.roll(v, -s)
    vprime = vp.reshape(7 * 9, C)                         # [63, C]

    # Algebraic fusion of the 1x1 'fusion' conv and the classifier:
    #   cam = ((x + edge) @ fuse_w.T) @ fc_w.T = (x + edge) @ W_cam
    # (logits are the spatial mean of cam + bias, so fuse_w never needs to be
    # applied on its own — the [mtot,C]@[C,C] matmul disappears entirely).
    wfct = np.zeros((C, n_pad), np.float32)
    wfct[:, :n_classes] = np.asarray(hp["fc_w"], np.float32).T
    wcam = np.asarray(hp["fuse_w"], np.float32).T @ wfct  # [C, n_pad]
    bfc = np.zeros((1, n_pad), np.float32)
    bfc[0, :n_classes] = np.asarray(hp["fc_b"], np.float32)

    return {
        "w1t_pad": jnp.asarray(w1t),      # [C, 128]
        "b1_pad": jnp.asarray(b1),        # [1, 128]
        "w2t_pad": jnp.asarray(w2t),      # [128, C]
        "b2": jnp.asarray(b2),            # [1, C]
        "w_sp": jnp.asarray(w_sp),        # [2*HW, HW]
        "vprime": jnp.asarray(vprime),    # [63, C]
        "wcam": jnp.asarray(wcam),        # [C, 128]
        "bfc_pad": jnp.asarray(bfc),      # [1, 128]
    }


# --------------------------------------------------------------------------
# Pallas head kernel (one grid step per batch block of bt images).
# --------------------------------------------------------------------------
def head_kernel(f_ref, w1t_ref, b1_ref, w2t_ref, b2_ref, wsp_ref,
                vp_ref, wcam_ref, bfc_ref,
                logits_ref, cams_ref, probas_ref,
                *, n_classes, fg_bias, edge_strength,
                hf, wf, taps, row_shifts, lane_shifts):
    bt, hw, C = f_ref.shape
    mtot = bt * hw
    n_pad = wcam_ref.shape[1]
    edt = jnp.bfloat16    # edge-conv compute dtype: bf16 VALUs on v6e/v7x
                          # (still lowers on v5e; f32 would be the marginally
                          # better pick there).

    f3 = f_ref[...]                                          # [bt, hw, C] f32

    # --- channel attention (SE), hidden lane-padded to 128 (lane-dense matmuls)
    gap = jnp.mean(f3, axis=1)                               # [bt, C]
    h = jnp.dot(gap, w1t_ref[...], preferred_element_type=jnp.float32) + b1_ref[...]
    h = jnp.maximum(h, 0.0)                                  # [bt, 128]
    ch_att = jax.nn.sigmoid(
        jnp.dot(h, w2t_ref[...], preferred_element_type=jnp.float32) + b2_ref[...])
    f3 = f3 * ch_att[:, None, :]

    # --- spatial attention: one fused Toeplitz matmul over [max_c | mean_c]
    smax = jnp.max(f3, axis=2)                               # [bt, hw]
    savg = jnp.mean(f3, axis=2)                              # [bt, hw]
    sp = jnp.dot(jnp.concatenate([smax, savg], axis=1), wsp_ref[...],
                 preferred_element_type=jnp.float32)         # [bt, hw]
    f3 = f3 * jax.nn.sigmoid(sp)[:, :, None]

    # --- grouped 3x3 edge conv: masked spatial (sublane) rolls + compact
    #     block-diagonal channel mixing.  Taps outermost: each rolled+masked
    #     copy is built once (f32 roll -> bf16) and accumulated into 7
    #     per-lane-shift bf16 accumulators; partials combine in f32 after the
    #     lane rolls.  The rolls over the flattened [bt*hw] rows wrap across
    #     image boundaries; the iota masks zero exactly those rows (validity
    #     only depends on the position inside the image, so the wrap is safe).
    f2 = f3.reshape(mtot, C)                                 # [mtot, C] f32
    row = jax.lax.broadcasted_iota(jnp.int32, (mtot, 1), 0)
    pix = row % hw
    yy = pix // wf
    xx = pix % wf

    n_sh = len(lane_shifts)
    accs = [jnp.zeros((mtot, C), edt) for _ in range(n_sh)]
    for t, (dy, dx) in enumerate(taps):
        sh = f2 if row_shifts[t] == 0 else pltpu.roll(f2, shift=row_shifts[t], axis=0)
        ok = None
        if dy < 0:
            ok = yy >= -dy
        elif dy > 0:
            ok = yy < hf - dy
        if dx < 0:
            c = xx >= -dx
            ok = c if ok is None else (ok & c)
        elif dx > 0:
            c = xx < wf - dx
            ok = c if ok is None else (ok & c)
        if ok is not None:
            sh = sh * ok.astype(sh.dtype)
        f_t = sh.astype(edt)                                 # [mtot, C] bf16
        for si in range(n_sh):
            w = vp_ref[pl.ds(si * 9 + t, 1), :].astype(edt)  # [1, C]
            accs[si] = accs[si] + f_t * w

    edge = jnp.zeros((mtot, C), jnp.float32)
    for si in range(n_sh):
        a = accs[si].astype(jnp.float32)
        if lane_shifts[si] != 0:
            a = pltpu.roll(a, shift=lane_shifts[si], axis=1)
        edge = edge + a
    edge_factor = jnp.mean(jnp.abs(f2 - edge), axis=1, keepdims=True)   # [mtot, 1]

    # --- fused fusion(1x1) ∘ fc projection (shared by logits and the CAM)
    cam = jnp.dot((f2 + edge).astype(jnp.bfloat16),
                  wcam_ref[...].astype(jnp.bfloat16),
                  preferred_element_type=jnp.float32)        # [mtot, n_pad]

    # --- logits = fc(avgpool(fusion(x+edge))) == spatial mean of cam + bias
    logits = jnp.mean(cam.reshape(bt, hw, n_pad), axis=1) + bfc_ref[...]  # [bt, n_pad]
    logits_ref[...] = logits[:, None, :]

    # --- softmax over the real (unpadded) class lanes
    lane = jax.lax.broadcasted_iota(jnp.int32, (bt, n_pad), 1)
    z = jnp.where(lane < n_classes, logits, -1e30)
    z = z - jnp.max(z, axis=1, keepdims=True)
    ez = jnp.exp(z)
    inv_sum = pl.reciprocal(jnp.sum(ez, axis=1, keepdims=True), approx=True)
    probas_ref[...] = (ez * inv_sum)[:, None, :]

    # --- Grad-CAM++-style maps: fg bias, edge enhancement, per-class min-max
    if n_classes > 1:
        lane2 = jax.lax.broadcasted_iota(jnp.int32, (mtot, n_pad), 1)
        cam = jnp.where(lane2 == 1, cam * fg_bias, cam)
    cam = cam * (1.0 + edge_strength * edge_factor)
    cam3 = cam.reshape(bt, hw, n_pad)
    mins = jnp.min(cam3, axis=1, keepdims=True)
    maxs = jnp.max(cam3, axis=1, keepdims=True)
    denom = maxs - mins
    inv = pl.reciprocal(jnp.where(denom > 0.0, denom, 1.0), approx=True)
    cam3 = jnp.where(denom > 0.0, (cam3 - mins) * inv, cam3)
    cams_ref[...] = cam3.astype(cams_ref.dtype)


def _pick_batch_block(batch, hw, target_rows=512, min_grid_steps=2):
    """Rows-per-step sizing: target ~target_rows flattened rows per grid step
    (amortises per-step overhead, fills the MXU M dim), but keep at least
    min_grid_steps steps so the ("parallel",) axis can shard across v7x's two
    TensorCores.  The wrapper zero-pads the batch up to a multiple of the
    returned block (no degenerate bt=1 for odd/prime batches)."""
    bt_max = max(1, target_rows // max(1, hw))
    n_steps = max(min(min_grid_steps, batch), -(-batch // bt_max))
    return max(1, -(-batch // n_steps))


def cam_head_pallas(features_nhwc, prepared, n_classes=NUM_CLASSES,
                    fg_bias=FOREGROUND_BIAS, edge_strength=EDGE_ENHANCEMENT):
    B, Hf, Wf, C = features_nhwc.shape
    HW = Hf * Wf
    n_pad = prepared["wcam"].shape[1]
    bt = _pick_batch_block(B, HW)
    B_pad = -(-B // bt) * bt
    mtot = bt * HW

    f = features_nhwc.reshape(B, HW, C)
    if B_pad != B:                       # zero images; their outputs are sliced off
        f = jnp.pad(f, ((0, B_pad - B), (0, 0), (0, 0)))

    sub_sign, lane_sign = _get_roll_signs()
    row_shifts = tuple((sub_sign * (-(dy * Wf + dx))) % mtot for dy, dx in _TAPS)
    lane_shifts = tuple((lane_sign * s) % C for s in range(-3, 4))

    kernel = functools.partial(
        head_kernel, n_classes=int(n_classes), fg_bias=float(fg_bias),
        edge_strength=float(edge_strength), hf=Hf, wf=Wf, taps=_TAPS,
        row_shifts=row_shifts, lane_shifts=lane_shifts)

    grid = (B_pad // bt,)
    c2 = lambda i: (0, 0)
    in_specs = [
        pl.BlockSpec((bt, HW, C), lambda i: (i, 0, 0)),          # features
        pl.BlockSpec(prepared["w1t_pad"].shape, c2),
        pl.BlockSpec(prepared["b1_pad"].shape, c2),
        pl.BlockSpec(prepared["w2t_pad"].shape, c2),
        pl.BlockSpec(prepared["b2"].shape, c2),
        pl.BlockSpec(prepared["w_sp"].shape, c2),
        pl.BlockSpec(prepared["vprime"].shape, c2),
        pl.BlockSpec(prepared["wcam"].shape, c2),
        pl.BlockSpec(prepared["bfc_pad"].shape, c2),
    ]
    out_specs = (
        pl.BlockSpec((bt, 1, n_pad), lambda i: (i, 0, 0)),
        pl.BlockSpec((bt, HW, n_pad), lambda i: (i, 0, 0)),
        pl.BlockSpec((bt, 1, n_pad), lambda i: (i, 0, 0)),
    )
    out_shape = (
        jax.ShapeDtypeStruct((B_pad, 1, n_pad), jnp.float32),    # logits (lane-padded)
        jax.ShapeDtypeStruct((B_pad, HW, n_pad), jnp.bfloat16),  # cams   (lane-padded, bf16 writeback)
        jax.ShapeDtypeStruct((B_pad, 1, n_pad), jnp.float32),    # probas (lane-padded)
    )

    logits_p, cams_p, probas_p = pl.pallas_call(
        kernel, grid=grid, in_specs=in_specs, out_specs=out_specs,
        out_shape=out_shape,
        compiler_params=pltpu.CompilerParams(
            dimension_semantics=("parallel",),
            vmem_limit_bytes=48 * 1024 * 1024),
    )(f, prepared["w1t_pad"], prepared["b1_pad"], prepared["w2t_pad"],
      prepared["b2"], prepared["w_sp"], prepared["vprime"],
      prepared["wcam"], prepared["bfc_pad"])

    logits = logits_p[:B, 0, :n_classes]
    probas = probas_p[:B, 0, :n_classes]
    cams = cams_p[:B, :, :n_classes].astype(jnp.float32).reshape(B, Hf, Wf, n_classes)
    cams = jnp.transpose(cams, (0, 3, 1, 2))                     # [B, n, Hf, Wf]
    return logits, cams, probas


def cam_model_forward(x_nchw, bb_params, prepared_head, return_cam=True,
                      n_classes=NUM_CLASSES):
    feats = backbone(x_nchw, bb_params)
    logits, cams, probas = cam_head_pallas(feats, prepared_head, n_classes=n_classes)
    if return_cam:
        return logits, cams, probas
    return logits


# --------------------------------------------------------------------------
# Pure-JAX reference of the head (independent lax.conv formulation) for checks.
# --------------------------------------------------------------------------
def head_reference(feats_nhwc, hp, n_classes=NUM_CLASSES,
                   fg_bias=FOREGROUND_BIAS, edge_strength=EDGE_ENHANCEMENT):
    B, H, W, C = feats_nhwc.shape
    x = feats_nhwc
    gap = jnp.mean(x, axis=(1, 2))
    h = jax.nn.relu(gap @ hp["ca_w1"].T + hp["ca_b1"])
    ca = jax.nn.sigmoid(h @ hp["ca_w2"].T + hp["ca_b2"])
    x = x * ca[:, None, None, :]
    smax = jnp.max(x, axis=3, keepdims=True)
    savg = jnp.mean(x, axis=3, keepdims=True)
    sc = jnp.concatenate([smax, savg], axis=3)
    w_sa = jnp.transpose(hp["sa_w"], (2, 3, 1, 0))
    sp = jax.lax.conv_general_dilated(sc, w_sa, (1, 1), [(3, 3), (3, 3)],
                                      dimension_numbers=("NHWC", "HWIO", "NHWC"))
    x = x * jax.nn.sigmoid(sp)
    w_e = jnp.transpose(hp["edge_w"], (2, 3, 1, 0))
    edge = jax.lax.conv_general_dilated(x, w_e, (1, 1), [(1, 1), (1, 1)],
                                        dimension_numbers=("NHWC", "HWIO", "NHWC"),
                                        feature_group_count=C // 4)
    edge_abs = jnp.abs(x - edge)
    g = jnp.einsum("bhwc,dc->bhwd", x + edge, hp["fuse_w"])
    pooled = jnp.mean(g, axis=(1, 2))
    logits = pooled @ hp["fc_w"].T + hp["fc_b"]
    probas = jax.nn.softmax(logits, axis=-1)
    cam = jnp.einsum("nc,bhwc->bnhw", hp["fc_w"], g)
    if n_classes > 1:
        cam = cam.at[:, 1].multiply(fg_bias)
    ef = jnp.mean(edge_abs, axis=3)                              # [B, H, W]
    cam = cam * (1.0 + edge_strength * ef[:, None, :, :])
    mins = jnp.min(cam, axis=(2, 3), keepdims=True)
    maxs = jnp.max(cam, axis=(2, 3), keepdims=True)
    denom = maxs - mins
    cam = jnp.where(denom > 0,
                    (cam - mins) / jnp.where(denom > 0, denom, 1.0),
                    cam)
    return logits, cam, probas


if __name__ == "__main__":
    key = jax.random.PRNGKey(0)
    k_bb, k_head, k_x = jax.random.split(key, 3)

    B, Cin, Himg, Wimg = 2, 3, 128, 128               # NCHW, like the PyTorch module
    x = jax.random.normal(k_x, (B, Cin, Himg, Wimg), jnp.float32)

    bb_params = init_backbone(k_bb)
    head_params = init_head(k_head, FEATURE_DIM, NUM_CLASSES)

    feats = backbone(x, bb_params)                    # [B, Hf, Wf, 512]
    Hf, Wf = int(feats.shape[1]), int(feats.shape[2])
    prepared = prepare_head(head_params, Hf, Wf, NUM_CLASSES)

    head_fn = jax.jit(functools.partial(cam_head_pallas, n_classes=NUM_CLASSES))
    logits, cams, probas = head_fn(feats, prepared)
    jax.block_until_ready((logits, cams, probas))

    assert logits.shape == (B, NUM_CLASSES)
    assert probas.shape == (B, NUM_CLASSES)
    assert cams.shape == (B, NUM_CLASSES, Hf, Wf)
    assert bool(jnp.all(jnp.isfinite(logits)))
    assert bool(jnp.all(jnp.isfinite(cams)))
    assert bool(jnp.all(jnp.isfinite(probas)))

    # return_cam=False path of the PyTorch module.
    logits_only = cam_model_forward(x, bb_params, prepared, return_cam=False)
    assert logits_only.shape == (B, NUM_CLASSES)

    # Numerical check of the Pallas head against the pure-JAX conv reference.
    # Tolerances account for the bf16 edge-conv working set / bf16 CAM matmul
    # operands (f32 accumulation everywhere).
    ref_logits, ref_cams, ref_probas = head_reference(
        feats, head_params, NUM_CLASSES, FOREGROUND_BIAS, EDGE_ENHANCEMENT)
    scale = max(1.0, float(jnp.max(jnp.abs(ref_logits))))
    assert float(jnp.max(jnp.abs(logits - ref_logits))) < 0.08 * scale
    assert float(jnp.max(jnp.abs(probas - ref_probas))) < 0.08
    assert float(jnp.max(jnp.abs(cams - ref_cams))) < 0.10

    print("KERNEL_OK")
</pallas_src>

<mosaic_0001>
module attributes {stable_mosaic.version = 11 : i64} {
  func.func @probe(%arg0: memref<8x128xf32, #tpu.memory_space<vmem>>, %arg1: memref<8x128xf32, #tpu.memory_space<vmem>>, %arg2: memref<8x128xf32, #tpu.memory_space<vmem>>) attributes {dimension_semantics = [], scalar_prefetch = 0 : i64, scratch_operands = 0 : i64, tpu.core_type = #tpu.core_type<tc>} {
    %c0 = arith.constant 0 : index
    %c0_0 = arith.constant 0 : index
    %0 = vector.load %arg0[%c0, %c0_0] : memref<8x128xf32, #tpu.memory_space<vmem>>, vector<8x128xf32>
    %c1_i32 = arith.constant 1 : i32
    %1 = tpu.dynamic_rotate %0 by %c1_i32 dim 0 : vector<8x128xf32>, i32 -> vector<8x128xf32>
    %c0_1 = arith.constant 0 : index
    %c0_2 = arith.constant 0 : index
    %2 = vector.load %arg1[%c0_1, %c0_2] : memref<8x128xf32, #tpu.memory_space<vmem>>, vector<8x128xf32>
    tpu.vector_store %arg1[%c0_1, %c0_2], %1 {strides = array<i32>} : memref<8x128xf32, #tpu.memory_space<vmem>>, vector<8x128xf32>,
    %c0_3 = arith.constant 0 : index
    %c0_4 = arith.constant 0 : index
    %3 = vector.load %arg0[%c0_3, %c0_4] : memref<8x128xf32, #tpu.memory_space<vmem>>, vector<8x128xf32>
    %c1_i32_5 = arith.constant 1 : i32
    %4 = tpu.dynamic_rotate %3 by %c1_i32_5 dim 1 : vector<8x128xf32>, i32 -> vector<8x128xf32>
    %c0_6 = arith.constant 0 : index
    %c0_7 = arith.constant 0 : index
    %5 = vector.load %arg2[%c0_6, %c0_7] : memref<8x128xf32, #tpu.memory_space<vmem>>, vector<8x128xf32>
    tpu.vector_store %arg2[%c0_6, %c0_7], %4 {strides = array<i32>} : memref<8x128xf32, #tpu.memory_space<vmem>>, vector<8x128xf32>,
    return
  }
}

</mosaic_0001>

<bundles_post_ra>
// kernel: tpu_custom_call.1
= control target key start
LH: loop header
LB: loop body
LE: loop exit
PB: predicated region body
PF: predicated region fallthrough
CT: control target
= control target key end

     0   :  { %8 = vsyncpa [#allocation3], 0  ;;  %s158_s0 = inlined_call_operand.hbm [shape: f32[8,128], index: 0, kind: input, shape index: {}]   ;;  %s159_s1 = inlined_call_operand.hbm [shape: f32[8,128], index: 1, kind: output, shape index: {0}]   ;;  %s160_s2 = inlined_call_operand.hbm [shape: f32[8,128], index: 2, kind: output, shape index: {1}]  }
   0x1   :  { %9 = vsyncpa [#allocation4], 0 }
   0x2   :  { %10 = vsyncpa [#allocation7], 0  ;;  %s130_s9 = smov [#allocation2]  }
   0x3   :  { %s17_s10 = sshll.u32 %s130_s9, 4  ;;  %s18_s10 = int_to_ptr.vmem [resolvable:$true] %s17_s10 }
   0x4   :  { %s72_s11 = scalar_lea.vmem %s18_s10, 128  ;;  %p77_p1 = scmp.lt.s32.totalorder %s18_s10, %s18_s10 }
   0x5   :  { %p73_p0 = scmp.ne.s32.totalorder %s18_s10, %s72_s11  ;;  %p78_p2 = scmp.lt.s32.totalorder %s72_s11, %s72_s11 }
   0x7   :  { %p79_p3 = por %p78_p2, %p77_p1 }
   0x9   :  { %p80_p4 = pnand %p79_p3, %p73_p0 }
   0xb   :  { %83 = shalt.err (!%p80_p4)
}
   0xc   :  { %20 = dma.hbm_to_vmem [thread:$0]  %s158_s0, 128, %s18_s10, [#allocation3]  }
   0xd   :  { %124 = dma.done.wait [#allocation3], 128  }
   0xe   :  { %125 = vsyncadd [#allocation3], 4294967168  ;;  %s131_s14 = smov [#allocation5]   ;;  %v27_v0 = vld [vmem:[#allocation2] sm:$0xff]  ;;  %s132_s16 = smov 1  }
   0xf   :  { %s37_s15 = sshll.u32 %s131_s14, 4  ;;  %28 = vrot.lane.b32.xlu0 %v27_v0, %s132_s16  ;;  %v25_v1 = vrot.slane %v27_v0, 7  ;;  %s38_s15 = int_to_ptr.vmem [resolvable:$true] %s37_s15 }
  0x10   :  { %s84_s17 = scalar_lea.vmem %s38_s15, 128  ;;  %p89_p6 = scmp.lt.s32.totalorder %s38_s15, %s38_s15 }
  0x11   :  { %26 = vst [vmem:[#allocation5] sm:$0xff] %v25_v1  ;;  %p85_p5 = scmp.ne.s32.totalorder %s38_s15, %s84_s17  ;;  %p90_p7 = scmp.lt.s32.totalorder %s84_s17, %s84_s17 }
  0x13   :  { %p91_p8 = por %p90_p7, %p89_p6 }
  0x15   :  { %p92_p9 = pnand %p91_p8, %p85_p5 }
  0x17   :  { %95 = shalt.err (!%p92_p9)
}
  0x18   :  { %40 = dma.vmem_to_hbm [thread:$0]  %s38_s15, 128, %s159_s1, [#allocation4]  }
  0x19   :  { %s133_s0 = smov [#allocation6]  }
  0x1a   :  { %s47_s20 = sshll.u32 %s133_s0, 4  ;;  %s48_s20 = int_to_ptr.vmem [resolvable:$true] %s47_s20 }
  0x1b   :  { %s104_s21 = scalar_lea.vmem %s48_s20, 128  ;;  %p109_p11 = scmp.lt.s32.totalorder %s48_s20, %s48_s20 }
  0x1c   :  { %p105_p10 = scmp.ne.s32.totalorder %s48_s20, %s104_s21  ;;  %p110_p12 = scmp.lt.s32.totalorder %s104_s21, %s104_s21 }
  0x1e   :  { %p111_p13 = por %p110_p12, %p109_p11 }
  0x20   :  { %p112_p0 = pnand %p111_p13, %p105_p10 }
  0x81   :  { %v29_v2 = vpop.permute.xlu0 %28 }
  0x82   :  { %30 = vst [vmem:[#allocation6] sm:$0xff] %v29_v2 }
  0x83   :  { %115 = shalt.err (!%p112_p0)
}
  0x84   :  { %50 = dma.vmem_to_hbm [thread:$0]  %s48_s20, 128, %s160_s2, [#allocation7]  }
  0x85   :  { %126 = dma.done.wait [#allocation4], 128  }
  0x86   :  { %127 = vsyncadd [#allocation4], 4294967168 }
  0x87   :  { %128 = dma.done.wait [#allocation7], 128  }
  0x88   :  { %129 = vsyncadd [#allocation7], 4294967168 }
  0x89   :  { %57 = vsyncpa [#allocation3], 1 }
  0x8a   :  { %58 = vsyncpa [#allocation4], 1 }
  0x8b   :  { %59 = vsyncpa [#allocation7], 1 }

</bundles_post_ra>
